<compile_context>
chip_gen: v5e
topology: v5e:2x2
jax: 0.10.0
libtpu: 0.0.40
codegen_flags: <defaults>
</compile_context>

<pallas_src>
import jax
import jax.numpy as jnp
from jax.experimental import pallas as pl
from jax.experimental.pallas import tpu as pltpu


def fingat_kernel(xg_ref, xa_ref, xs_ref, wfg_ref, wfa_ref, wfs_ref, bf_ref,
                  w1_ref, b1_ref, w2r_ref, w2m_ref, b2_ref, out_ref):
    bf16 = jnp.bfloat16

    # Fusion layer as a split-K sum over the three embedding slabs:
    #   fused = relu(xg @ Wf[:G] + xa @ Wf[G:G+A] + xs @ Wf[G+A:] + bf)
    acc = jnp.dot(xg_ref[...].astype(bf16), wfg_ref[...],
                  preferred_element_type=jnp.float32)
    acc = acc + jnp.dot(xa_ref[...].astype(bf16), wfa_ref[...],
                        preferred_element_type=jnp.float32)
    acc = acc + jnp.dot(xs_ref[...].astype(bf16), wfs_ref[...],
                        preferred_element_type=jnp.float32)
    fused = jnp.maximum(acc + bf_ref[...], 0.0)                     # (TM, H) f32

    # Fused head hidden layer: [h_r | h_m] = relu(fused @ [Wr1|Wm1] + [br1|bm1])
    h = jnp.dot(fused.astype(bf16), w1_ref[...],
                preferred_element_type=jnp.float32) + b1_ref[...]
    h = jnp.maximum(h, 0.0)                                         # (TM, H) f32

    # 2-wide final projection on the VPU + XLU lane reduce (an MXU matmul
    # would be <1% utilized).  w2r / w2m are zero-padded to all H lanes so no
    # partial-lane slicing is needed; sigmoid only on the movement head.
    rr = jnp.sum(h * w2r_ref[...], axis=-1, keepdims=True) + b2_ref[:, 0:1]
    mv = jnp.sum(h * w2m_ref[...], axis=-1, keepdims=True) + b2_ref[:, 1:2]
    mv = jax.nn.sigmoid(mv)                                         # (TM, 1)

    # Lane-dense store: transpose the tiny (TM, 2) result -> (2, TM).
    out = jnp.concatenate([rr, mv], axis=-1).T
    out_ref[...] = out.astype(out_ref.dtype)


def init_params(key, attentive_dim=16, graph_dim=16, sector_dim=16, hidden_dim=64):
    """Deterministic PyTorch-Linear-style (uniform +/- 1/sqrt(fan_in)) init."""
    def linear(k, fan_in, fan_out):
        k1, k2 = jax.random.split(k)
        bound = 1.0 / jnp.sqrt(float(fan_in))
        w = jax.random.uniform(k1, (fan_in, fan_out), jnp.float32, -bound, bound)
        b = jax.random.uniform(k2, (1, fan_out), jnp.float32, -bound, bound)
        return w, b

    in_dim = attentive_dim + graph_dim + sector_dim
    ks = jax.random.split(key, 5)
    wf, bf = linear(ks[0], in_dim, hidden_dim)
    wr1, br1 = linear(ks[1], hidden_dim, hidden_dim // 2)
    wr2, br2 = linear(ks[2], hidden_dim // 2, 1)
    wm1, bm1 = linear(ks[3], hidden_dim // 2 * 2, hidden_dim // 2)
    wm2, bm2 = linear(ks[4], hidden_dim // 2, 1)
    return (wf, bf, wr1, br1, wr2, br2, wm1, bm1, wm2, bm2)


def prepare_params(params, *, graph_dim=16, attentive_dim=16, sector_dim=16):
    """One-time packing / bf16 casting of the weights (hoisted out of forward)."""
    (wf, bf, wr1, br1, wr2, br2, wm1, bm1, wm2, bm2) = params
    hid = wf.shape[1]
    half = hid // 2
    g, a = graph_dim, attentive_dim
    bf16 = jnp.bfloat16

    # Split the fusion weight by input slab (concat order: graph|attentive|sector).
    wf_g = wf[:g].astype(bf16)
    wf_a = wf[g:g + a].astype(bf16)
    wf_s = wf[g + a:].astype(bf16)

    # Pack the two head hidden layers into one wide matmul.
    w1 = jnp.concatenate([wr1, wm1], axis=1).astype(bf16)           # (H, H)
    b1 = jnp.concatenate([br1, bm1], axis=1)                        # (1, H) f32

    # Final 2-wide projection as two zero-padded H-lane row vectors (VPU path).
    zeros = jnp.zeros((half, 1), jnp.float32)
    w2r = jnp.concatenate([wr2, zeros], axis=0).reshape(1, hid)     # (1, H) f32
    w2m = jnp.concatenate([zeros, wm2], axis=0).reshape(1, hid)     # (1, H) f32
    b2 = jnp.concatenate([br2, bm2], axis=1)                        # (1, 2) f32
    return (wf_g, wf_a, wf_s, bf, w1, b1, w2r, w2m, b2)


def _round_up(x, m):
    return (x + m - 1) // m * m


def fingat_forward(attentive_emb, graph_emb, sector_emb, prepared,
                   *, max_tile=8192, min_split=256):
    (wf_g, wf_a, wf_s, bf, w1, b1, w2r, w2m, b2) = prepared
    hid = w1.shape[1]

    # Mirror the PyTorch squeeze(1) for 3-D graph / attentive inputs.
    if graph_emb.ndim > 2:
        graph_emb = jnp.squeeze(graph_emb, axis=1)
    if attentive_emb.ndim > 2:
        attentive_emb = jnp.squeeze(attentive_emb, axis=1)

    n = graph_emb.shape[0]
    gd = graph_emb.shape[1]
    ad = attentive_emb.shape[1]
    sd = sector_emb.shape[1]

    # Row-tile selection:
    #  * small N  -> single tile (block dims == array dims, no constraints);
    #  * medium N -> exactly 2 tiles so both v7x TensorCores get work
    #               (tile is a multiple of 128 so the (2, TM) output block is legal);
    #  * large N  -> 8192-row tiles (amortizes step overhead; ~10-15 MiB VMEM).
    if n <= min_split:
        tm = n
    else:
        tm = min(max_tile, _round_up(pl.cdiv(n, 2), 128))
    grid = (pl.cdiv(n, tm),)      # ragged last tile: Pallas pads reads / masks writes

    row = lambda i: (i, 0)        # row-tiled embeddings
    col = lambda i: (0, i)        # lane-dense output tile
    res = lambda i: (0, 0)        # weights / biases resident across tiles

    out = pl.pallas_call(
        fingat_kernel,
        out_shape=jax.ShapeDtypeStruct((2, n), jnp.float32),
        grid=grid,
        in_specs=[
            pl.BlockSpec((tm, gd), row),     # graph emb tile      (f32)
            pl.BlockSpec((tm, ad), row),     # attentive emb tile  (f32)
            # For v5e, pipeline_mode=pl.Buffered(3) on these x specs can hide
            # residual DMA latency; left at the default double-buffering here.
            pl.BlockSpec((tm, sd), row),     # sector emb tile     (f32)
            pl.BlockSpec((gd, hid), res),    # Wf[:G]      (bf16)
            pl.BlockSpec((ad, hid), res),    # Wf[G:G+A]   (bf16)
            pl.BlockSpec((sd, hid), res),    # Wf[G+A:]    (bf16)
            pl.BlockSpec((1, hid), res),     # bf          (f32)
            pl.BlockSpec((hid, hid), res),   # [Wr1|Wm1]   (bf16)
            pl.BlockSpec((1, hid), res),     # [br1|bm1]   (f32)
            pl.BlockSpec((1, hid), res),     # w2r row     (f32)
            pl.BlockSpec((1, hid), res),     # w2m row     (f32)
            pl.BlockSpec((1, 2), res),       # [br2|bm2]   (f32)
        ],
        out_specs=pl.BlockSpec((2, tm), col),
        compiler_params=pltpu.CompilerParams(
            dimension_semantics=("parallel",),
            vmem_limit_bytes=48 * 1024 * 1024),
    )(graph_emb, attentive_emb, sector_emb,
      wf_g, wf_a, wf_s, bf, w1, b1, w2r, w2m, b2)

    # Free row slices of the lane-dense slab (== .squeeze(-1).view(-1)).
    return out[0], out[1]


if __name__ == "__main__":
    key = jax.random.PRNGKey(0)
    k_att, k_graph, k_sect, k_params = jax.random.split(key, 4)

    N = 64                      # number of stocks (small demo; kernel tiles for large N)
    ATT, GR, SEC, HID = 16, 16, 16, 64

    attentive_emb = jax.random.normal(k_att, (N, ATT), jnp.float32)
    graph_emb = jax.random.normal(k_graph, (N, 1, GR), jnp.float32)  # exercises squeeze(1)
    sector_emb = jax.random.normal(k_sect, (N, SEC), jnp.float32)

    params = init_params(k_params, ATT, GR, SEC, HID)
    prepared = prepare_params(params, graph_dim=GR, attentive_dim=ATT, sector_dim=SEC)

    rr, mv = jax.jit(fingat_forward)(attentive_emb, graph_emb, sector_emb, prepared)
    jax.block_until_ready((rr, mv))

    assert rr.shape == (N,) and mv.shape == (N,)
    assert bool(jnp.all((mv >= 0.0) & (mv <= 1.0)))

    # Pure-JAX f32 reference (kernel uses bf16 MXU operands -> loose tolerance).
    (wf, bf, wr1, br1, wr2, br2, wm1, bm1, wm2, bm2) = params
    x = jnp.concatenate([graph_emb[:, 0, :], attentive_emb, sector_emb], axis=-1)
    fused = jax.nn.relu(x @ wf + bf)
    rr_ref = (jax.nn.relu(fused @ wr1 + br1) @ wr2 + br2)[:, 0]
    mv_ref = jax.nn.sigmoid(jax.nn.relu(fused @ wm1 + bm1) @ wm2 + bm2)[:, 0]
    assert bool(jnp.allclose(rr, rr_ref, rtol=5e-2, atol=5e-2)), "return-ratio mismatch"
    assert bool(jnp.allclose(mv, mv_ref, rtol=5e-2, atol=5e-2)), "movement mismatch"

    print("KERNEL_OK")
</pallas_src>

<mosaic_0001>
module attributes {stable_mosaic.version = 11 : i64} {
  func.func @fingat_kernel(%arg0: i32, %arg1: memref<64x16xf32, #tpu.memory_space<vmem>>, %arg2: memref<64x16xf32, #tpu.memory_space<vmem>>, %arg3: memref<64x16xf32, #tpu.memory_space<vmem>>, %arg4: memref<16x64xbf16, #tpu.memory_space<vmem>>, %arg5: memref<16x64xbf16, #tpu.memory_space<vmem>>, %arg6: memref<16x64xbf16, #tpu.memory_space<vmem>>, %arg7: memref<1x64xf32, #tpu.memory_space<vmem>>, %arg8: memref<64x64xbf16, #tpu.memory_space<vmem>>, %arg9: memref<1x64xf32, #tpu.memory_space<vmem>>, %arg10: memref<1x64xf32, #tpu.memory_space<vmem>>, %arg11: memref<1x64xf32, #tpu.memory_space<vmem>>, %arg12: memref<1x2xf32, #tpu.memory_space<vmem>>, %arg13: memref<2x64xf32, #tpu.memory_space<vmem>>) attributes {dimension_semantics = [#tpu.dimension_semantics<parallel>], iteration_bounds = array<i64: 1>, scalar_prefetch = 0 : i64, scratch_operands = 0 : i64, tpu.core_type = #tpu.core_type<tc>, window_params = [{transform_indices = @transform_0, window_bounds = array<i64: 64, 16>}, {transform_indices = @transform_1, window_bounds = array<i64: 64, 16>}, {transform_indices = @transform_2, window_bounds = array<i64: 64, 16>}, {pipeline_mode = #tpu.pipeline_mode<synchronous>, transform_indices = @transform_3, window_bounds = array<i64: 16, 64>}, {pipeline_mode = #tpu.pipeline_mode<synchronous>, transform_indices = @transform_4, window_bounds = array<i64: 16, 64>}, {pipeline_mode = #tpu.pipeline_mode<synchronous>, transform_indices = @transform_5, window_bounds = array<i64: 16, 64>}, {pipeline_mode = #tpu.pipeline_mode<synchronous>, transform_indices = @transform_6, window_bounds = array<i64: 1, 64>}, {pipeline_mode = #tpu.pipeline_mode<synchronous>, transform_indices = @transform_7, window_bounds = array<i64: 64, 64>}, {pipeline_mode = #tpu.pipeline_mode<synchronous>, transform_indices = @transform_8, window_bounds = array<i64: 1, 64>}, {pipeline_mode = #tpu.pipeline_mode<synchronous>, transform_indices = @transform_9, window_bounds = array<i64: 1, 64>}, {pipeline_mode = #tpu.pipeline_mode<synchronous>, transform_indices = @transform_10, window_bounds = array<i64: 1, 64>}, {pipeline_mode = #tpu.pipeline_mode<synchronous>, transform_indices = @transform_11, window_bounds = array<i64: 1, 2>}, {transform_indices = @transform_12, window_bounds = array<i64: 2, 64>}]} {
    %c0 = arith.constant 0 : index
    %c0_0 = arith.constant 0 : index
    %0 = vector.load %arg1[%c0, %c0_0] : memref<64x16xf32, #tpu.memory_space<vmem>>, vector<64x16xf32>
    %1 = arith.truncf %0 : vector<64x16xf32> to vector<64x16xbf16>
    %c0_1 = arith.constant 0 : index
    %c0_2 = arith.constant 0 : index
    %2 = vector.load %arg4[%c0_1, %c0_2] : memref<16x64xbf16, #tpu.memory_space<vmem>>, vector<16x64xbf16>
    %cst = arith.constant dense<0.000000e+00> : vector<64x64xf32>
    %3 = tpu.matmul %1, %2, %cst {dimension_numbers = #tpu.dot_dimension_numbers<[1], [0], [0], [1], [0, 0, 1, 1], [], []>} : vector<64x16xbf16>, vector<16x64xbf16>, vector<64x64xf32> -> vector<64x64xf32>
    %c0_3 = arith.constant 0 : index
    %c0_4 = arith.constant 0 : index
    %4 = vector.load %arg2[%c0_3, %c0_4] : memref<64x16xf32, #tpu.memory_space<vmem>>, vector<64x16xf32>
    %5 = arith.truncf %4 : vector<64x16xf32> to vector<64x16xbf16>
    %c0_5 = arith.constant 0 : index
    %c0_6 = arith.constant 0 : index
    %6 = vector.load %arg5[%c0_5, %c0_6] : memref<16x64xbf16, #tpu.memory_space<vmem>>, vector<16x64xbf16>
    %cst_7 = arith.constant dense<0.000000e+00> : vector<64x64xf32>
    %7 = tpu.matmul %5, %6, %cst_7 {dimension_numbers = #tpu.dot_dimension_numbers<[1], [0], [0], [1], [0, 0, 1, 1], [], []>} : vector<64x16xbf16>, vector<16x64xbf16>, vector<64x64xf32> -> vector<64x64xf32>
    %8 = arith.addf %3, %7 : vector<64x64xf32>
    %c0_8 = arith.constant 0 : index
    %c0_9 = arith.constant 0 : index
    %9 = vector.load %arg3[%c0_8, %c0_9] : memref<64x16xf32, #tpu.memory_space<vmem>>, vector<64x16xf32>
    %10 = arith.truncf %9 : vector<64x16xf32> to vector<64x16xbf16>
    %c0_10 = arith.constant 0 : index
    %c0_11 = arith.constant 0 : index
    %11 = vector.load %arg6[%c0_10, %c0_11] : memref<16x64xbf16, #tpu.memory_space<vmem>>, vector<16x64xbf16>
    %cst_12 = arith.constant dense<0.000000e+00> : vector<64x64xf32>
    %12 = tpu.matmul %10, %11, %cst_12 {dimension_numbers = #tpu.dot_dimension_numbers<[1], [0], [0], [1], [0, 0, 1, 1], [], []>} : vector<64x16xbf16>, vector<16x64xbf16>, vector<64x64xf32> -> vector<64x64xf32>
    %13 = arith.addf %8, %12 : vector<64x64xf32>
    %c0_13 = arith.constant 0 : index
    %c0_14 = arith.constant 0 : index
    %14 = vector.load %arg7[%c0_13, %c0_14] : memref<1x64xf32, #tpu.memory_space<vmem>>, vector<1x64xf32>
    %15 = vector.broadcast %14 : vector<1x64xf32> to vector<64x64xf32>
    %16 = arith.addf %13, %15 : vector<64x64xf32>
    %cst_15 = arith.constant 0.000000e+00 : f32
    %17 = vector.broadcast %cst_15 : f32 to vector<64x64xf32>
    %18 = arith.maximumf %16, %17 : vector<64x64xf32>
    %19 = arith.truncf %18 : vector<64x64xf32> to vector<64x64xbf16>
    %c0_16 = arith.constant 0 : index
    %c0_17 = arith.constant 0 : index
    %20 = vector.load %arg8[%c0_16, %c0_17] : memref<64x64xbf16, #tpu.memory_space<vmem>>, vector<64x64xbf16>
    %cst_18 = arith.constant dense<0.000000e+00> : vector<64x64xf32>
    %21 = tpu.matmul %19, %20, %cst_18 {dimension_numbers = #tpu.dot_dimension_numbers<[1], [0], [0], [1], [0, 0, 1, 1], [], []>} : vector<64x64xbf16>, vector<64x64xbf16>, vector<64x64xf32> -> vector<64x64xf32>
    %c0_19 = arith.constant 0 : index
    %c0_20 = arith.constant 0 : index
    %22 = vector.load %arg9[%c0_19, %c0_20] : memref<1x64xf32, #tpu.memory_space<vmem>>, vector<1x64xf32>
    %23 = vector.broadcast %22 : vector<1x64xf32> to vector<64x64xf32>
    %24 = arith.addf %21, %23 : vector<64x64xf32>
    %cst_21 = arith.constant 0.000000e+00 : f32
    %25 = vector.broadcast %cst_21 : f32 to vector<64x64xf32>
    %26 = arith.maximumf %24, %25 : vector<64x64xf32>
    %c0_22 = arith.constant 0 : index
    %c0_23 = arith.constant 0 : index
    %27 = vector.load %arg10[%c0_22, %c0_23] : memref<1x64xf32, #tpu.memory_space<vmem>>, vector<1x64xf32>
    %28 = vector.broadcast %27 : vector<1x64xf32> to vector<64x64xf32>
    %29 = arith.mulf %26, %28 : vector<64x64xf32>
    %cst_24 = arith.constant dense<0.000000e+00> : vector<64xf32>
    %30 = vector.multi_reduction <add>, %29, %cst_24 [1] : vector<64x64xf32> to vector<64xf32>
    %31 = vector.shape_cast %30 : vector<64xf32> to vector<64x1xf32>
    %c0_25 = arith.constant 0 : index
    %c0_26 = arith.constant 0 : index
    %32 = vector.load %arg12[%c0_25, %c0_26] : memref<1x2xf32, #tpu.memory_space<vmem>>, vector<1x1xf32>
    %33 = vector.broadcast %32 : vector<1x1xf32> to vector<64x1xf32>
    %34 = arith.addf %31, %33 : vector<64x1xf32>
    %c0_27 = arith.constant 0 : index
    %c0_28 = arith.constant 0 : index
    %35 = vector.load %arg11[%c0_27, %c0_28] : memref<1x64xf32, #tpu.memory_space<vmem>>, vector<1x64xf32>
    %36 = vector.broadcast %35 : vector<1x64xf32> to vector<64x64xf32>
    %37 = arith.mulf %26, %36 : vector<64x64xf32>
    %cst_29 = arith.constant dense<0.000000e+00> : vector<64xf32>
    %38 = vector.multi_reduction <add>, %37, %cst_29 [1] : vector<64x64xf32> to vector<64xf32>
    %39 = vector.shape_cast %38 : vector<64xf32> to vector<64x1xf32>
    %c0_30 = arith.constant 0 : index
    %c1 = arith.constant 1 : index
    %40 = vector.load %arg12[%c0_30, %c1] : memref<1x2xf32, #tpu.memory_space<vmem>>, vector<1x1xf32>
    %41 = vector.broadcast %40 : vector<1x1xf32> to vector<64x1xf32>
    %42 = arith.addf %39, %41 : vector<64x1xf32>
    %43 = arith.negf %42 : vector<64x1xf32>
    %44 = math.exp %43 : vector<64x1xf32>
    %cst_31 = arith.constant 1.000000e+00 : f32
    %45 = vector.broadcast %cst_31 : f32 to vector<64x1xf32>
    %46 = arith.addf %45, %44 : vector<64x1xf32>
    %47 = arith.divf %45, %46 : vector<64x1xf32>
    %48 = tpu.concatenate %34, %47 in 1 : vector<64x1xf32>, vector<64x1xf32> -> vector<64x2xf32>
    %49 = tpu.transpose %48, [1, 0] : vector<64x2xf32> -> vector<2x64xf32>
    %c0_32 = arith.constant 0 : index
    %c0_33 = arith.constant 0 : index
    %50 = vector.load %arg13[%c0_32, %c0_33] : memref<2x64xf32, #tpu.memory_space<vmem>>, vector<2x64xf32>
    tpu.vector_store %arg13[%c0_32, %c0_33], %49 {strides = array<i32>} : memref<2x64xf32, #tpu.memory_space<vmem>>, vector<2x64xf32>,
    return
  }
  func.func @transform_0(%arg0: i32) -> (i32, i32) {
    %c0_i32 = arith.constant 0 : i32
    %c0_i32_0 = arith.constant 0 : i32
    return %arg0, %c0_i32 : i32, i32
  }
  func.func @transform_1(%arg0: i32) -> (i32, i32) {
    %c0_i32 = arith.constant 0 : i32
    %c0_i32_0 = arith.constant 0 : i32
    return %arg0, %c0_i32 : i32, i32
  }
  func.func @transform_2(%arg0: i32) -> (i32, i32) {
    %c0_i32 = arith.constant 0 : i32
    %c0_i32_0 = arith.constant 0 : i32
    return %arg0, %c0_i32 : i32, i32
  }
  func.func @transform_3(%arg0: i32) -> (i32, i32) {
    %c0_i32 = arith.constant 0 : i32
    %c0_i32_0 = arith.constant 0 : i32
    %c0_i32_1 = arith.constant 0 : i32
    return %c0_i32, %c0_i32_0 : i32, i32
  }
  func.func @transform_4(%arg0: i32) -> (i32, i32) {
    %c0_i32 = arith.constant 0 : i32
    %c0_i32_0 = arith.constant 0 : i32
    %c0_i32_1 = arith.constant 0 : i32
    return %c0_i32, %c0_i32_0 : i32, i32
  }
  func.func @transform_5(%arg0: i32) -> (i32, i32) {
    %c0_i32 = arith.constant 0 : i32
    %c0_i32_0 = arith.constant 0 : i32
    %c0_i32_1 = arith.constant 0 : i32
    return %c0_i32, %c0_i32_0 : i32, i32
  }
  func.func @transform_6(%arg0: i32) -> (i32, i32) {
    %c0_i32 = arith.constant 0 : i32
    %c0_i32_0 = arith.constant 0 : i32
    %c0_i32_1 = arith.constant 0 : i32
    return %c0_i32, %c0_i32_0 : i32, i32
  }
  func.func @transform_7(%arg0: i32) -> (i32, i32) {
    %c0_i32 = arith.constant 0 : i32
    %c0_i32_0 = arith.constant 0 : i32
    %c0_i32_1 = arith.constant 0 : i32
    return %c0_i32, %c0_i32_0 : i32, i32
  }
  func.func @transform_8(%arg0: i32) -> (i32, i32) {
    %c0_i32 = arith.constant 0 : i32
    %c0_i32_0 = arith.constant 0 : i32
    %c0_i32_1 = arith.constant 0 : i32
    return %c0_i32, %c0_i32_0 : i32, i32
  }
  func.func @transform_9(%arg0: i32) -> (i32, i32) {
    %c0_i32 = arith.constant 0 : i32
    %c0_i32_0 = arith.constant 0 : i32
    %c0_i32_1 = arith.constant 0 : i32
    return %c0_i32, %c0_i32_0 : i32, i32
  }
  func.func @transform_10(%arg0: i32) -> (i32, i32) {
    %c0_i32 = arith.constant 0 : i32
    %c0_i32_0 = arith.constant 0 : i32
    %c0_i32_1 = arith.constant 0 : i32
    return %c0_i32, %c0_i32_0 : i32, i32
  }
  func.func @transform_11(%arg0: i32) -> (i32, i32) {
    %c0_i32 = arith.constant 0 : i32
    %c0_i32_0 = arith.constant 0 : i32
    %c0_i32_1 = arith.constant 0 : i32
    return %c0_i32, %c0_i32_0 : i32, i32
  }
  func.func @transform_12(%arg0: i32) -> (i32, i32) {
    %c0_i32 = arith.constant 0 : i32
    %c0_i32_0 = arith.constant 0 : i32
    return %c0_i32, %arg0 : i32, i32
  }
}

</mosaic_0001>

<bundles_post_ra>
// kernel: fingat_forward.1
= control target key start
LH: loop header
LB: loop body
LE: loop exit
PB: predicated region body
PF: predicated region fallthrough
CT: control target
= control target key end

     0   :  { %vm76_vm0 = vcmask 130048   ;;  %vm294_vm1 = vcmask 523264   ;;  %vm588_vm6 = vcmask 7168   ;;  %s1042_s4 = inlined_call_operand.vmem [shape: bf16[16,64], index: 4, kind: input, shape index: {}]   ;;  %s1043_s3 = inlined_call_operand.vmem [shape: bf16[16,64], index: 3, kind: input, shape index: {}]   ;;  %s1044_s5 = inlined_call_operand.vmem [shape: bf16[16,64], index: 5, kind: input, shape index: {}]   ;;  %s1045_s1 = inlined_call_operand.vmem [shape: f32[64,16], index: 1, kind: input, shape index: {}]   ;;  %s1046_s0 = inlined_call_operand.vmem [shape: f32[64,16], index: 0, kind: input, shape index: {}]   ;;  %s1047_s2 = inlined_call_operand.vmem [shape: f32[64,16], index: 2, kind: input, shape index: {}]   ;;  %s1048_s6 = inlined_call_operand.vmem [shape: f32[1,64], index: 6, kind: input, shape index: {}]   ;;  %s1049_s8 = inlined_call_operand.vmem [shape: f32[1,64], index: 8, kind: input, shape index: {}]   ;;  %s1050_s7 = inlined_call_operand.vmem [shape: bf16[64,64], index: 7, kind: input, shape index: {}]   ;;  %s1051_s10 = inlined_call_operand.vmem [shape: f32[1,64], index: 10, kind: input, shape index: {}]   ;;  %s1052_s9 = inlined_call_operand.vmem [shape: f32[1,64], index: 9, kind: input, shape index: {}]   ;;  %s1053_s11 = inlined_call_operand.vmem [shape: f32[1,2], index: 11, kind: input, shape index: {}]   ;;  %s1054_s12 = inlined_call_operand.vmem [shape: f32[2,64], index: 12, kind: output, shape index: {}]  }
   0x1   :  { %v688_v0 = vld [vmem:[%s1042_s4] sm:$0xff]  ;;  %v57_v4 = vld [vmem:[%s1045_s1 + $0x8] sm:$0xff]  ;;  %v58_v12 = vld [vmem:[%s1045_s1 + $0x10] sm:$0xff] }
   0x2   :  { %v687_v1 = vld [vmem:[%s1043_s3] sm:$0xff]  ;;  %96 = vmatpush.bf16.msra.mxu0 %v688_v0  ;;  %v43_v7 = vld [vmem:[%s1046_s0 + $0x8] sm:$0xff]  ;;  %v59_v13 = vld [vmem:[%s1045_s1 + $0x18] sm:$0xff] }
   0x3   :  { %v689_v2 = vld [vmem:[%s1044_s5] sm:$0xff]  ;;  %143 = vmatpush.bf16.msra.mxu1 %v687_v1  ;;  %v166_v9 = vld [vmem:[%s1047_s2 + $0x8] sm:$0xff]  ;;  %v44_v14 = vld [vmem:[%s1046_s0 + $0x10] sm:$0xff]  ;;  %v65_v18 = vpack.c.bf16 %v59_v13, %v58_v12 }
   0x4   :  { %v56_v3 = vld [vmem:[%s1045_s1] sm:$0xff]  ;;  %204 = vmatpush.bf16.msra.mxu2 %v689_v2  ;;  %v45_v15 = vld [vmem:[%s1046_s0 + $0x18] sm:$0xff]  ;;  %v167_v16 = vld [vmem:[%s1047_s2 + $0x10] sm:$0xff] }
   0x5   :  { %v42_v5 = vld [vmem:[%s1046_s0] sm:$0xff]  ;;  %v64_v6 = vpack.c.bf16 %v57_v4, %v56_v3  ;;  %v168_v17 = vld [vmem:[%s1047_s2 + $0x18] sm:$0xff]  ;;  %v51_v19 = vpack.c.bf16 %v45_v15, %v44_v14  ;;  %v61_v22 = vld [vmem:[%s1045_s1 + $0x28] sm:$0xff] }
   0x6   :  { %v165_v8 = vld [vmem:[%s1047_s2] sm:$0xff]  ;;  %v50_v10 = vpack.c.bf16 %v43_v7, %v42_v5  ;;  %v174_v20 = vpack.c.bf16 %v168_v17, %v167_v16  ;;  %v47_v24 = vld [vmem:[%s1046_s0 + $0x28] sm:$0xff]  ;;  %v62_v30 = vld [vmem:[%s1045_s1 + $0x30] sm:$0xff] }
   0x7   :  { %v173_v11 = vpack.c.bf16 %v166_v9, %v165_v8  ;;  %639 = vmatmul.msk.bf16.vlgmr.msra.gmra.mxu0 %vm76_vm0, %v64_v6  ;;  %v60_v21 = vld [vmem:[%s1045_s1 + $0x20] sm:$0xff]  ;;  %v170_v26 = vld [vmem:[%s1047_s2 + $0x28] sm:$0xff]  ;;  %v63_v31 = vld [vmem:[%s1045_s1 + $0x38] sm:$0xff] }
   0x8   :  { %647 = vmatmul.msk.bf16.vlgmr.msra.gmra.mxu1 %vm76_vm0, %v50_v10  ;;  %v46_v23 = vld [vmem:[%s1046_s0 + $0x20] sm:$0xff]  ;;  %v66_v27 = vpack.c.bf16 %v61_v22, %v60_v21  ;;  %v48_v32 = vld [vmem:[%s1046_s0 + $0x30] sm:$0xff]  ;;  %v49_v33 = vld [vmem:[%s1046_s0 + $0x38] sm:$0xff]  ;;  %v67_v36 = vpack.c.bf16 %v63_v31, %v62_v30 }
   0x9   :  { %655 = vmatmul.msk.bf16.vlgmr.msra.gmra.mxu2 %vm76_vm0, %v173_v11  ;;  %v169_v25 = vld [vmem:[%s1047_s2 + $0x20] sm:$0xff]  ;;  %v52_v28 = vpack.c.bf16 %v47_v24, %v46_v23  ;;  %v171_v34 = vld [vmem:[%s1047_s2 + $0x30] sm:$0xff]  ;;  %v172_v35 = vld [vmem:[%s1047_s2 + $0x38] sm:$0xff]  ;;  %v53_v37 = vpack.c.bf16 %v49_v33, %v48_v32 }
   0xa   :  { %v175_v29 = vpack.c.bf16 %v170_v26, %v169_v25  ;;  %v176_v38 = vpack.c.bf16 %v172_v35, %v171_v34  ;;  %v693_v39 = vld [vmem:[%s1050_s7 + $0x18] sm:$0xff]  ;;  %v692_v40 = vld [vmem:[%s1050_s7 + $0x10] sm:$0xff]  ;;  %v691_v41 = vld [vmem:[%s1050_s7 + $0x8] sm:$0xff] }
   0xb   :  { %311 = vmatpush.bf16.msra.mxu3 %v693_v39  ;;  %v690_v42 = vld [vmem:[%s1050_s7] sm:$0xff] }
   0xc   :  { %v695_v50 = vld [vmem:[%s1048_s6] ss:$0 sm:$0xff] }
   0xf   :  { %312 = vmatpush.bf16.msra.mxu3 %v692_v40  ;;  %v696_v40 = vld [vmem:[%s1049_s8] ss:$0 sm:$0xff] }
  0x13   :  { %313 = vmatpush.bf16.msra.mxu3 %v691_v41 }
  0x17   :  { %640 = vmatmul.msk.bf16.gmra.mxu0 %vm76_vm0, %v65_v18  ;;  %314 = vmatpush.bf16.msra.mxu3 %v690_v42 }
  0x18   :  { %648 = vmatmul.msk.bf16.gmra.mxu1 %vm76_vm0, %v51_v19 }
  0x19   :  { %656 = vmatmul.msk.bf16.gmra.mxu2 %vm76_vm0, %v174_v20 }
  0x27   :  { %641 = vmatmul.msk.bf16.gmra.mxu0 %vm76_vm0, %v66_v27 }
  0x28   :  { %649 = vmatmul.msk.bf16.gmra.mxu1 %vm76_vm0, %v52_v28 }
  0x29   :  { %657 = vmatmul.msk.bf16.gmra.mxu2 %vm76_vm0, %v175_v29 }
  0x37   :  { %642 = vmatmul.msk.bf16.gmra.mxu0 %vm76_vm0, %v67_v36 }
  0x38   :  { %650 = vmatmul.msk.bf16.gmra.mxu1 %vm76_vm0, %v53_v37 }
  0x39   :  { %658 = vmatmul.msk.bf16.gmra.mxu2 %vm76_vm0, %v176_v38 }
  0x84   :  { %v98_v43 = vpop.f32.mrf.mxu0 }
  0x85   :  { %v145_v44 = vpop.f32.mrf.mxu1 }
  0x86   :  { %v146_v46 = vadd.f32 %v145_v44, %v98_v43  ;;  %v697_v43 = vld [vmem:[%s1051_s10] ss:$0 sm:$0xff] }
  0x8c   :  { %v206_v45 = vpop.f32.mrf.mxu2  ;;  %v100_v47 = vpop.f32.mrf.mxu0 }
  0x8d   :  { %v147_v48 = vpop.f32.mrf.mxu1  ;;  %v226_v49 = vadd.f32 %v206_v45, %v146_v46 }
  0x8e   :  { %v148_v51 = vadd.f32 %v147_v48, %v100_v47 }
  0x8f   :  { %v238_v53 = vadd.f32 %v695_v50, %v226_v49 }
  0x91   :  { %v246_v58 = vmax.f32 %v238_v53, 0.0 }
  0x94   :  { %v208_v52 = vpop.f32.mrf.mxu2  ;;  %v103_v55 = vpop.f32.mrf.mxu0 }
  0x95   :  { %v227_v54 = vadd.f32 %v208_v52, %v148_v51  ;;  %v150_v56 = vpop.f32.mrf.mxu1 }
  0x96   :  { %v151_v62 = vadd.f32 %v150_v56, %v103_v55 }
  0x97   :  { %v239_v57 = vadd.f32 %v695_v50, %v227_v54 }
  0x99   :  { %v247_v59 = vmax.f32 %v239_v57, 0.0 }
  0x9b   :  { %v254_v60 = vpack.c.bf16 %v247_v59, %v246_v58 }
  0x9c   :  { %v211_v61 = vpop.f32.mrf.mxu2  ;;  %v105_v63 = vpop.f32.mrf.mxu0 }
  0x9d   :  { %675 = vmatmul.msk.bf16.vlgmr.msra.gmra.mxu3 %vm294_vm1, %v254_v60  ;;  %v152_v0 = vpop.f32.mrf.mxu1  ;;  %v228_v1 = vadd.f32 %v211_v61, %v151_v62 }
  0x9e   :  { %v153_v2 = vadd.f32 %v152_v0, %v105_v63  ;;  %v698_v0 = vld [vmem:[%s1052_s9] ss:$0 sm:$0xff] }
  0x9f   :  { %v240_v4 = vadd.f32 %v695_v50, %v228_v1 }
  0xa1   :  { %v248_v9 = vmax.f32 %v240_v4, 0.0 }
  0xa4   :  { %v213_v3 = vpop.f32.mrf.mxu2  ;;  %v108_v6 = vpop.f32.mrf.mxu0 }
  0xa5   :  { %v229_v5 = vadd.f32 %v213_v3, %v153_v2  ;;  %v155_v7 = vpop.f32.mrf.mxu1 }
  0xa6   :  { %v156_v13 = vadd.f32 %v155_v7, %v108_v6 }
  0xa7   :  { %v241_v8 = vadd.f32 %v695_v50, %v229_v5 }
  0xa9   :  { %v249_v10 = vmax.f32 %v241_v8, 0.0 }
  0xab   :  { %v255_v11 = vpack.c.bf16 %v249_v10, %v248_v9 }
  0xac   :  { %v216_v12 = vpop.f32.mrf.mxu2  ;;  %v110_v14 = vpop.f32.mrf.mxu0 }
  0xad   :  { %676 = vmatmul.msk.bf16.gmra.mxu3 %vm294_vm1, %v255_v11  ;;  %v157_v15 = vpop.f32.mrf.mxu1  ;;  %v230_v16 = vadd.f32 %v216_v12, %v156_v13 }
  0xae   :  { %v158_v17 = vadd.f32 %v157_v15, %v110_v14 }
  0xaf   :  { %v242_v19 = vadd.f32 %v695_v50, %v230_v16 }
  0xb1   :  { %v250_v24 = vmax.f32 %v242_v19, 0.0 }
  0xb4   :  { %v218_v18 = vpop.f32.mrf.mxu2  ;;  %v113_v21 = vpop.f32.mrf.mxu0 }
  0xb5   :  { %v231_v20 = vadd.f32 %v218_v18, %v158_v17  ;;  %v160_v22 = vpop.f32.mrf.mxu1 }
  0xb6   :  { %v161_v28 = vadd.f32 %v160_v22, %v113_v21 }
  0xb7   :  { %v243_v23 = vadd.f32 %v695_v50, %v231_v20 }
  0xb9   :  { %v251_v25 = vmax.f32 %v243_v23, 0.0 }
  0xbb   :  { %v256_v26 = vpack.c.bf16 %v251_v25, %v250_v24 }
  0xbc   :  { %v221_v27 = vpop.f32.mrf.mxu2  ;;  %v115_v29 = vpop.f32.mrf.mxu0 }
  0xbd   :  { %677 = vmatmul.msk.bf16.gmra.mxu3 %vm294_vm1, %v256_v26  ;;  %v162_v30 = vpop.f32.mrf.mxu1  ;;  %v232_v31 = vadd.f32 %v221_v27, %v161_v28 }
  0xbe   :  { %v163_v32 = vadd.f32 %v162_v30, %v115_v29 }
  0xbf   :  { %v244_v34 = vadd.f32 %v695_v50, %v232_v31 }
  0xc1   :  { %v252_v37 = vmax.f32 %v244_v34, 0.0 }
  0xc4   :  { %v223_v33 = vpop.f32.mrf.mxu2 }
  0xc5   :  { %v233_v35 = vadd.f32 %v223_v33, %v163_v32 }
  0xc7   :  { %v245_v36 = vadd.f32 %v695_v50, %v233_v35  ;;  %v937_v35 = vld [vmem:[%s1053_s11] ss:$0 sm:$0xff] }
  0xc9   :  { %v253_v38 = vmax.f32 %v245_v36, 0.0 }
  0xcb   :  { %v257_v39 = vpack.c.bf16 %v253_v38, %v252_v37 }
  0xcd   :  { %678 = vmatmul.msk.bf16.gmra.mxu3 %vm294_vm1, %v257_v39 }
 0x120   :  { %v316_v41 = vpop.f32.mrf.mxu3 }
 0x121   :  { %v317_v42 = vadd.f32 %v696_v40, %v316_v41 }
 0x123   :  { %v336_v44 = vmax.f32 %v317_v42, 0.0 }
 0x125   :  { %v396_v45 = vmul.f32 %v697_v43, %v336_v44  ;;  %v348_v16 = vmul.f32 %v698_v0, %v336_v44 }
 0x127   :  { %v404_v46 = vsel %vm294_vm1, %v396_v45, 0.0  ;;  %v356_v19 = vsel %vm294_vm1, %v348_v16, 0.0 }
 0x128   :  { %v318_v47 = vpop.f32.mrf.mxu3  ;;  %405 = vadd.xlane.f32.xlu0 %v404_v46 }
 0x129   :  { %v319_v48 = vadd.f32 %v696_v40, %v318_v47 }
 0x12b   :  { %v337_v49 = vmax.f32 %v319_v48, 0.0 }
 0x12d   :  { %v397_v50 = vmul.f32 %v697_v43, %v337_v49  ;;  %v349_v23 = vmul.f32 %v698_v0, %v337_v49 }
 0x12f   :  { %v407_v51 = vsel %vm294_vm1, %v397_v50, 0.0  ;;  %v359_v27 = vsel %vm294_vm1, %v349_v23, 0.0 }
 0x130   :  { %v321_v52 = vpop.f32.mrf.mxu3  ;;  %408 = vadd.xlane.f32.xlu0 %v407_v51 }
 0x131   :  { %v322_v53 = vadd.f32 %v696_v40, %v321_v52 }
 0x133   :  { %v338_v54 = vmax.f32 %v322_v53, 0.0 }
 0x135   :  { %v398_v55 = vmul.f32 %v697_v43, %v338_v54  ;;  %v350_v2 = vmul.f32 %v698_v0, %v338_v54 }
 0x137   :  { %v410_v56 = vsel %vm294_vm1, %v398_v55, 0.0  ;;  %v362_v5 = vsel %vm294_vm1, %v350_v2, 0.0 }
 0x138   :  { %v323_v57 = vpop.f32.mrf.mxu3  ;;  %411 = vadd.xlane.f32.xlu1 %v410_v56 }
 0x139   :  { %v324_v58 = vadd.f32 %v696_v40, %v323_v57 }
 0x13b   :  { %v339_v59 = vmax.f32 %v324_v58, 0.0 }
 0x13d   :  { %v399_v60 = vmul.f32 %v697_v43, %v339_v59  ;;  %v351_v24 = vmul.f32 %v698_v0, %v339_v59 }
 0x13f   :  { %v413_v61 = vsel %vm294_vm1, %v399_v60, 0.0  ;;  %v365_v28 = vsel %vm294_vm1, %v351_v24, 0.0 }
 0x140   :  { %v326_v62 = vpop.f32.mrf.mxu3  ;;  %414 = vadd.xlane.f32.xlu1 %v413_v61 }
 0x141   :  { %v327_v63 = vadd.f32 %v696_v40, %v326_v62 }
 0x143   :  { %v340_v1 = vmax.f32 %v327_v63, 0.0 }
 0x145   :  { %v400_v3 = vmul.f32 %v697_v43, %v340_v1  ;;  %v352_v29 = vmul.f32 %v698_v0, %v340_v1 }
 0x147   :  { %v416_v4 = vsel %vm294_vm1, %v400_v3, 0.0  ;;  %v368_v31 = vsel %vm294_vm1, %v352_v29, 0.0 }
 0x148   :  { %v328_v6 = vpop.f32.mrf.mxu3  ;;  %417 = vadd.xlane.f32.xlu2 %v416_v4  ;;  %363 = vadd.xlane.f32.xlu1 %v362_v5 }
 0x149   :  { %v329_v7 = vadd.f32 %v696_v40, %v328_v6 }
 0x14b   :  { %v341_v8 = vmax.f32 %v329_v7, 0.0 }
 0x14d   :  { %v401_v9 = vmul.f32 %v697_v43, %v341_v8  ;;  %v353_v10 = vmul.f32 %v698_v0, %v341_v8 }
 0x14f   :  { %v419_v11 = vsel %vm294_vm1, %v401_v9, 0.0  ;;  %v371_v12 = vsel %vm294_vm1, %v353_v10, 0.0 }
 0x150   :  { %v331_v13 = vpop.f32.mrf.mxu3  ;;  %420 = vadd.xlane.f32.xlu2 %v419_v11  ;;  %372 = vadd.xlane.f32.xlu1 %v371_v12 }
 0x151   :  { %v332_v14 = vadd.f32 %v696_v40, %v331_v13 }
 0x153   :  { %v342_v15 = vmax.f32 %v332_v14, 0.0 }
 0x155   :  { %v402_v17 = vmul.f32 %v697_v43, %v342_v15  ;;  %v354_v30 = vmul.f32 %v698_v0, %v342_v15 }
 0x157   :  { %v422_v18 = vsel %vm294_vm1, %v402_v17, 0.0  ;;  %v374_v32 = vsel %vm294_vm1, %v354_v30, 0.0 }
 0x158   :  { %v333_v20 = vpop.f32.mrf.mxu3  ;;  %423 = vadd.xlane.f32.xlu0 %v422_v18  ;;  %357 = vadd.xlane.f32.xlu2 %v356_v19 }
 0x159   :  { %v334_v21 = vadd.f32 %v696_v40, %v333_v20 }
 0x15b   :  { %v343_v22 = vmax.f32 %v334_v21, 0.0 }
 0x15d   :  { %v403_v25 = vmul.f32 %v697_v43, %v343_v22  ;;  %v355_v33 = vmul.f32 %v698_v0, %v343_v22 }
 0x15f   :  { %v425_v26 = vsel %vm294_vm1, %v403_v25, 0.0  ;;  %v377_v34 = vsel %vm294_vm1, %v355_v33, 0.0 }
 0x160   :  { %426 = vadd.xlane.f32.xlu1 %v425_v26  ;;  %360 = vadd.xlane.f32.xlu0 %v359_v27 }
 0x161   :  { %366 = vadd.xlane.f32.xlu2 %v365_v28 }
 0x168   :  { %369 = vadd.xlane.f32.xlu0 %v368_v31 }
 0x169   :  { %375 = vadd.xlane.f32.xlu2 %v374_v32 }
 0x170   :  { %378 = vadd.xlane.f32.xlu0 %v377_v34 }
 0x19b   :  { %v406_v36 = vpop.xlane.xlu0 %405 }
 0x19c   :  { %v428_v37 = vadd.f32 %v937_v35, %v406_v36 }
 0x19e   :  { %v679_v38 = vmul.f32 -1.442695, %v428_v37 }
 0x1a0   :  { %700 = vpow2.f32 %v679_v38 }
 0x1a3   :  { %v409_v39 = vpop.xlane.xlu0 %408 }
 0x1a4   :  { %v429_v40 = vadd.f32 %v937_v35, %v409_v39 }
 0x1a6   :  { %v680_v41 = vmul.f32 -1.442695, %v429_v40  ;;  %v701_v42 = vpop.eup %700 }
 0x1a7   :  { %v460_v45 = vadd.f32 1.0, %v701_v42 }
 0x1a8   :  { %702 = vpow2.f32 %v680_v41 }
 0x1a9   :  { %704 = vrcp.f32 %v460_v45  ;;  %v479_v8 = vand.u32 2147483648, %v460_v45  ;;  %vm473_vm3 = vweird.f32 %v460_v45  ;;  %v477_v9 = vand.u32 2147483647, %v460_v45 }
 0x1ab   :  { %v412_v43 = vpop.xlane.xlu1 %411  ;;  %v480_v17 = vor.u32 1.1754944e-38, %v479_v8  ;;  %vm478_vm5 = vcmp.eq.f32.partialorder %v477_v9, 8.507059e+37 }
 0x1ac   :  { %v430_v44 = vadd.f32 %v937_v35, %v412_v43 }
 0x1ae   :  { %v681_v46 = vmul.f32 -1.442695, %v430_v44  ;;  %v703_v47 = vpop.eup %702 }
 0x1af   :  { %v943_v50 = vadd.f32 1.0, %v703_v47  ;;  %v705_v51 = vpop.eup %704 }
 0x1b0   :  { %706 = vpow2.f32 %v681_v46  ;;  %v469_v54 = vmul.f32 %v705_v51, %v460_v45  ;;  %vm474_vm2 = vweird.f32 %v705_v51 }
 0x1b1   :  { %708 = vrcp.f32 %v943_v50  ;;  %vm475_vm4 = vmor %vm473_vm3, %vm474_vm2  ;;  %v492_v27 = vand.u32 2147483647, %v943_v50  ;;  %v494_v28 = vand.u32 2147483648, %v943_v50  ;;  %vm488_vm8 = vweird.f32 %v943_v50 }
 0x1b2   :  { %v470_v58 = vsub.f32 1.0, %v469_v54 }
 0x1b3   :  { %v415_v48 = vpop.xlane.xlu1 %414  ;;  %vm493_vm10 = vcmp.eq.f32.partialorder %v492_v27, 8.507059e+37  ;;  %v495_v37 = vor.u32 1.1754944e-38, %v494_v28 }
 0x1b4   :  { %v431_v49 = vadd.f32 %v937_v35, %v415_v48  ;;  %v471_v63 = vmul.f32 %v705_v51, %v470_v58 }
 0x1b6   :  { %v707_v52 = vpop.eup %706  ;;  %v682_v53 = vmul.f32 -1.442695, %v431_v49  ;;  %v472_v6 = vadd.f32 %v705_v51, %v471_v63 }
 0x1b7   :  { %v946_v55 = vadd.f32 1.0, %v707_v52  ;;  %v949_v59 = vpop.eup %708 }
 0x1b8   :  { %710 = vpow2.f32 %v682_v53  ;;  %v484_v0 = vmul.f32 %v949_v59, %v943_v50  ;;  %v476_v13 = vsel %vm475_vm4, %v705_v51, %v472_v6  ;;  %vm489_vm7 = vweird.f32 %v949_v59 }
 0x1b9   :  { %712 = vrcp.f32 %v946_v55  ;;  %v481_v22 = vsel %vm478_vm5, %v480_v17, %v476_v13  ;;  %vm490_vm9 = vmor %vm488_vm8, %vm489_vm7  ;;  %vm503_vm12 = vweird.f32 %v946_v55  ;;  %v509_v42 = vand.u32 2147483648, %v946_v55 }
 0x1ba   :  { %v485_v7 = vsub.f32 1.0, %v484_v0  ;;  %v507_v45 = vand.u32 2147483647, %v946_v55 }
 0x1bb   :  { %v418_v56 = vpop.xlane.xlu2 %417  ;;  %v952_v61 = vpop.xlane.xlu1 %363  ;;  %v510_v50 = vor.u32 1.1754944e-38, %v509_v42 }
 0x1bc   :  { %v432_v57 = vadd.f32 %v937_v35, %v418_v56  ;;  %v486_v14 = vmul.f32 %v949_v59, %v485_v7  ;;  %vm508_vm14 = vcmp.eq.f32.partialorder %v507_v45, 8.507059e+37 }
 0x1be   :  { %v683_v60 = vmul.f32 -1.442695, %v432_v57  ;;  %v711_v62 = vpop.eup %710  ;;  %v487_v25 = vadd.f32 %v949_v59, %v486_v14 }
 0x1bf   :  { %v957_v3 = vpop.eup %712  ;;  %v959_v4 = vadd.f32 1.0, %v711_v62 }
 0x1c0   :  { %714 = vpow2.f32 %v683_v60  ;;  %v499_v10 = vmul.f32 %v957_v3, %v946_v55  ;;  %v491_v31 = vsel %vm490_vm9, %v949_v59, %v487_v25  ;;  %vm504_vm11 = vweird.f32 %v957_v3 }
 0x1c1   :  { %716 = vrcp.f32 %v959_v4  ;;  %v496_v41 = vsel %vm493_vm10, %v495_v37, %v491_v31  ;;  %vm505_vm13 = vmor %vm503_vm12, %vm504_vm11  ;;  %v386_v55 = vadd.f32 %v937_v35, %v952_v61  ;;  %v524_v62 = vand.u32 2147483648, %v959_v4 }
 0x1c2   :  { %v500_v20 = vsub.f32 1.0, %v499_v10  ;;  %vm518_vm0 = vweird.f32 %v959_v4  ;;  %v522_v0 = vand.u32 2147483647, %v959_v4 }
 0x1c3   :  { %v421_v1 = vpop.xlane.xlu2 %420  ;;  %v964_v12 = vpop.xlane.xlu1 %372  ;;  %v525_v6 = vor.u32 1.1754944e-38, %v524_v62 }
 0x1c4   :  { %v433_v2 = vadd.f32 %v937_v35, %v421_v1  ;;  %v501_v30 = vmul.f32 %v957_v3, %v500_v20  ;;  %vm523_vm2 = vcmp.eq.f32.partialorder %v522_v0, 8.507059e+37 }
 0x1c6   :  { %v684_v5 = vmul.f32 -1.442695, %v433_v2  ;;  %v715_v11 = vpop.eup %714  ;;  %v502_v40 = vadd.f32 %v957_v3, %v501_v30 }
 0x1c7   :  { %v969_v21 = vadd.f32 1.0, %v715_v11  ;;  %v974_v26 = vpop.eup %716 }
 0x1c8   :  { %718 = vpow2.f32 %v684_v5  ;;  %v514_v32 = vmul.f32 %v974_v26, %v959_v4  ;;  %v506_v49 = vsel %vm505_vm13, %v957_v3, %v502_v40  ;;  %vm519_vm15 = vweird.f32 %v974_v26 }
 0x1c9   :  { %720 = vrcp.f32 %v969_v21  ;;  %v511_v54 = vsel %vm508_vm14, %v510_v50, %v506_v49  ;;  %vm520_vm1 = vmor %vm518_vm0, %vm519_vm15  ;;  %v539_v13 = vand.u32 2147483648, %v969_v21  ;;  %vm533_vm4 = vweird.f32 %v969_v21 }
 0x1ca   :  { %v515_v46 = vsub.f32 1.0, %v514_v32  ;;  %v591_v57 = vsel %vm588_vm6, %v386_v55, %v511_v54  ;;  %v537_v14 = vand.u32 2147483647, %v969_v21  ;;  %v389_v32 = vadd.f32 %v937_v35, %v964_v12 }
 0x1cb   :  { %v424_v15 = vpop.xlane.xlu0 %423  ;;  %v358_v16 = vpop.xlane.xlu2 %357 }
 0x1cc   :  { %v434_v18 = vadd.f32 %v937_v35, %v424_v15  ;;  %v384_v19 = vadd.f32 %v937_v35, %v358_v16  ;;  %v516_v51 = vmul.f32 %v974_v26, %v515_v46  ;;  %vm538_vm7 = vcmp.eq.f32.partialorder %v537_v14, 8.507059e+37 }
 0x1ce   :  { %v685_v23 = vmul.f32 -1.442695, %v434_v18  ;;  %v589_v24 = vsel %vm588_vm6, %v384_v19, %v481_v22  ;;  %v719_v29 = vpop.eup %718  ;;  %v517_v58 = vadd.f32 %v974_v26, %v516_v51  ;;  %v540_v19 = vor.u32 1.1754944e-38, %v539_v13 }
 0x1cf   :  { %597 = vxpose.xlu1.b32.start [1/8] (short) (narrow) %v589_v24, 8  ;;  %v984_v33 = vadd.f32 1.0, %v719_v29  ;;  %v721_v47 = vpop.eup %720 }
 0x1d0   :  { %722 = vpow2.f32 %v685_v23  ;;  %v529_v52 = vmul.f32 %v721_v47, %v969_v21  ;;  %v521_v2 = vsel %vm520_vm1, %v974_v26, %v517_v58  ;;  %vm534_vm3 = vweird.f32 %v721_v47 }
 0x1d1   :  { %724 = vrcp.f32 %v984_v33  ;;  %v526_v9 = vsel %vm523_vm2, %v525_v6, %v521_v2  ;;  %vm535_vm5 = vmor %vm533_vm4, %vm534_vm3  ;;  %v554_v25 = vand.u32 2147483648, %v984_v33  ;;  %vm548_vm9 = vweird.f32 %v984_v33 }
 0x1d2   :  { %v530_v59 = vsub.f32 1.0, %v529_v52  ;;  %v552_v21 = vand.u32 2147483647, %v984_v33  ;;  %vm629_vm4 = vcmask 517120  }
 0x1d3   :  { %v427_v34 = vpop.xlane.xlu1 %426  ;;  %v361_v36 = vpop.xlane.xlu0 %360  ;;  %v555_v30 = vor.u32 1.1754944e-38, %v554_v25 }
 0x1d4   :  { %v435_v38 = vadd.f32 %v937_v35, %v427_v34  ;;  %v385_v39 = vadd.f32 %v937_v35, %v361_v36  ;;  %v367_v60 = vpop.xlane.xlu2 %366  ;;  %v531_v3 = vmul.f32 %v721_v47, %v530_v59  ;;  %vm553_vm11 = vcmp.eq.f32.partialorder %v552_v21, 8.507059e+37 }
 0x1d5   :  { %v387_v1 = vadd.f32 %v937_v35, %v367_v60 }
 0x1d6   :  { %v686_v43 = vmul.f32 -1.442695, %v435_v38  ;;  %v590_v44 = vsel %vm588_vm6, %v385_v39, %v496_v41  ;;  %v723_v48 = vpop.eup %722  ;;  %v532_v11 = vadd.f32 %v721_v47, %v531_v3 }
 0x1d7   :  { %598 = vxpose.xlu1.b32.cont [2/8] (short) (narrow) %v590_v44, 8  ;;  %v998_v53 = vadd.f32 1.0, %v723_v48  ;;  %v725_v56 = vpop.eup %724  ;;  %v592_v10 = vsel %vm588_vm6, %v387_v1, %v526_v9 }
 0x1d8   :  { %726 = vpow2.f32 %v686_v43  ;;  %v544_v61 = vmul.f32 %v725_v56, %v984_v33  ;;  %v536_v18 = vsel %vm535_vm5, %v721_v47, %v532_v11  ;;  %vm549_vm8 = vweird.f32 %v725_v56 }
 0x1d9   :  { %728 = vrcp.f32 %v998_v53  ;;  %v541_v24 = vsel %vm538_vm7, %v540_v19, %v536_v18  ;;  %vm550_vm10 = vmor %vm548_vm9, %vm549_vm8  ;;  %v569_v37 = vand.u32 2147483648, %v998_v53  ;;  %vm563_vm13 = vweird.f32 %v998_v53 }
 0x1da   :  { %v545_v7 = vsub.f32 1.0, %v544_v61  ;;  %v567_v33 = vand.u32 2147483647, %v998_v53 }
 0x1db   :  { %v370_v4 = vpop.xlane.xlu0 %369  ;;  %v570_v42 = vor.u32 1.1754944e-38, %v569_v37 }
 0x1dc   :  { %v546_v15 = vmul.f32 %v725_v56, %v545_v7  ;;  %v388_v17 = vadd.f32 %v937_v35, %v370_v4  ;;  %v376_v41 = vpop.xlane.xlu2 %375  ;;  %vm568_vm15 = vcmp.eq.f32.partialorder %v567_v33, 8.507059e+37 }
 0x1dd   :  { %v390_v12 = vadd.f32 %v937_v35, %v376_v41 }
 0x1de   :  { %v727_v63 = vpop.eup %726  ;;  %v547_v20 = vadd.f32 %v725_v56, %v546_v15  ;;  %v593_v26 = vsel %vm588_vm6, %v388_v17, %v541_v24 }
 0x1df   :  { %599 = vxpose.xlu1.b32.cont [3/8] (short) (narrow) %v591_v57, 8  ;;  %v1012_v5 = vadd.f32 1.0, %v727_v63  ;;  %v729_v8 = vpop.eup %728 }
 0x1e0   :  { %v559_v16 = vmul.f32 %v729_v8, %v998_v53  ;;  %v551_v27 = vsel %vm550_vm10, %v725_v56, %v547_v20  ;;  %vm564_vm12 = vweird.f32 %v729_v8 }
 0x1e1   :  { %730 = vrcp.f32 %v1012_v5  ;;  %v556_v31 = vsel %vm553_vm11, %v555_v30, %v551_v27  ;;  %vm565_vm14 = vmor %vm563_vm13, %vm564_vm12  ;;  %v584_v45 = vand.u32 2147483648, %v1012_v5  ;;  %vm578_vm1 = vweird.f32 %v1012_v5 }
 0x1e2   :  { %v560_v22 = vsub.f32 1.0, %v559_v16  ;;  %v594_v38 = vsel %vm588_vm6, %v389_v32, %v556_v31  ;;  %v582_v47 = vand.u32 2147483647, %v1012_v5 }
 0x1e3   :  { %v379_v49 = vpop.xlane.xlu0 %378  ;;  %v585_v50 = vor.u32 1.1754944e-38, %v584_v45 }
 0x1e4   :  { %v561_v28 = vmul.f32 %v729_v8, %v560_v22  ;;  %vm583_vm3 = vcmp.eq.f32.partialorder %v582_v47, 8.507059e+37  ;;  %v391_v52 = vadd.f32 %v937_v35, %v379_v49 }
 0x1e6   :  { %v562_v34 = vadd.f32 %v729_v8, %v561_v28 }
 0x1e7   :  { %600 = vxpose.xlu1.b32.cont [4/8] (short) (narrow) %v592_v10, 8  ;;  %v731_v23 = vpop.eup %730 }
 0x1e8   :  { %v574_v29 = vmul.f32 %v731_v23, %v1012_v5  ;;  %v566_v39 = vsel %vm565_vm14, %v729_v8, %v562_v34  ;;  %vm579_vm0 = vweird.f32 %v731_v23 }
 0x1e9   :  { %v571_v43 = vsel %vm568_vm15, %v570_v42, %v566_v39  ;;  %vm580_vm2 = vmor %vm578_vm1, %vm579_vm0 }
 0x1ea   :  { %v575_v36 = vsub.f32 1.0, %v574_v29  ;;  %v595_v46 = vsel %vm588_vm6, %v390_v12, %v571_v43 }
 0x1ec   :  { %v576_v40 = vmul.f32 %v731_v23, %v575_v36 }
 0x1ee   :  { %v577_v44 = vadd.f32 %v731_v23, %v576_v40 }
 0x1ef   :  { %601 = vxpose.xlu1.b32.cont [5/8] (short) (narrow) %v593_v26, 8 }
 0x1f0   :  { %v581_v48 = vsel %vm580_vm2, %v731_v23, %v577_v44 }
 0x1f1   :  { %v586_v51 = vsel %vm583_vm3, %v585_v50, %v581_v48 }
 0x1f2   :  { %v596_v53 = vsel %vm588_vm6, %v391_v52, %v586_v51 }
 0x1f7   :  { %602 = vxpose.xlu1.b32.cont [6/8] (short) (narrow) %v594_v38, 8 }
 0x1ff   :  { %603 = vxpose.xlu1.b32.cont [7/8] (short) (narrow) %v595_v46, 8 }
 0x207   :  { %604 = vxpose.xlu1.b32.end [8/8] (short) (narrow) %v596_v53, 8 }
 0x273   :  { %v613_v54 = vpop.trf.xlu1 }
 0x274   :  { %630 = vst.msk [vmem:[%s1054_s12] sm:$0x3] %vm629_vm4, %v613_v54 }

</bundles_post_ra>
